<compile_context>
chip_gen: v7x
topology: tpu7x:2x2x1
jax: 0.10.0
libtpu: 0.0.40
codegen_flags: <defaults>
</compile_context>

<pallas_src>
import functools

import jax
import jax.numpy as jnp
from jax.experimental import pallas as pl
from jax.experimental.pallas import tpu as pltpu


def _supcon_kernel(feat_ref, lab_row_ref, lab_col_ref, loss_ref, *, inv_temperature):
    # feat_ref:    (B, D) float  VMEM
    # lab_row_ref: (B, 1) int32  VMEM
    # lab_col_ref: (1, B) int32  VMEM (precomputed in wrapper; no in-kernel transpose)
    # loss_ref:    (1, 1) float32 VMEM
    f = feat_ref[...].astype(jnp.float32)          # (B, D), math in f32
    lab_row = lab_row_ref[...]                     # (B, 1)
    lab_col = lab_col_ref[...]                     # (1, B)
    B = f.shape[0]

    # --- F.normalize(features, dim=1): one rsqrt + one multiply -------------
    sq_norm = jnp.sum(f * f, axis=1, keepdims=True)            # (B, 1)
    # rsqrt(max(sq, 1e-24)) == 1 / max(||f||, 1e-12)  (torch eps semantics)
    inv_norm = jax.lax.rsqrt(jnp.maximum(sq_norm, 1e-24))      # (B, 1)
    fn = f * inv_norm                                          # (B, D)

    # --- similarity matrix on the MXU, contracting last dims (no fn.T) ------
    sim = jax.lax.dot_general(
        fn, fn,
        dimension_numbers=(((1,), (1,)), ((), ())),
        preferred_element_type=jnp.float32,
    ) * inv_temperature                                        # (B, B)

    # --- subtract per-row max (logits_max.detach()) --------------------------
    logits = sim - jnp.max(sim, axis=1, keepdims=True)         # (B, B)

    # --- positives mask (same label, off-diagonal) in one shot ---------------
    row_idx = jax.lax.broadcasted_iota(jnp.int32, (B, B), 0)
    col_idx = jax.lax.broadcasted_iota(jnp.int32, (B, B), 1)
    pos = (lab_row == lab_col) & (row_idx != col_idx)          # bool (B, B)
    maskf = jnp.where(pos, 1.0, 0.0)                           # f32, 0/1

    # --- masked log-prob exactly as in the PyTorch module --------------------
    exp_masked = jnp.where(pos, jnp.exp(logits), 0.0)          # exp(logits) * mask
    denom = jnp.sum(exp_masked, axis=1, keepdims=True) + 1e-9  # (B, 1)
    log_prob = logits - jnp.log(denom)                         # (B, B)

    num = jnp.sum(jnp.where(pos, log_prob, 0.0), axis=1, keepdims=True)  # (B, 1)
    cnt = jnp.sum(maskf, axis=1, keepdims=True) + 1e-9                   # (B, 1)
    mean_log_prob_pos = num / cnt                                        # (B, 1)

    # loss = -mean over batch; stays vector-shaped (1,1), no scalar extract
    loss_ref[...] = -(jnp.sum(mean_log_prob_pos, axis=0, keepdims=True) / B)


def supervised_contrastive_loss(features, labels, temperature=0.5):
    """features: (B, D) float (f32 or bf16); labels: (B,) int. Returns scalar f32 loss."""
    B, D = features.shape
    # No wrapper cast of features: bf16 inputs keep half the HBM->VMEM DMA bytes.
    lab_row = labels.reshape(B, 1).astype(jnp.int32)
    lab_col = labels.reshape(1, B).astype(jnp.int32)

    kernel = functools.partial(
        _supcon_kernel, inv_temperature=float(1.0 / temperature)
    )

    out = pl.pallas_call(
        kernel,
        out_shape=jax.ShapeDtypeStruct((1, 1), jnp.float32),
        in_specs=[
            pl.BlockSpec((B, D), lambda: (0, 0)),
            pl.BlockSpec((B, 1), lambda: (0, 0)),
            pl.BlockSpec((1, B), lambda: (0, 0)),
        ],
        out_specs=pl.BlockSpec((1, 1), lambda: (0, 0)),
        # Explicit scoped-VMEM limit (plenty of headroom here, valid on v5e/v6e/v7x).
        compiler_params=pltpu.CompilerParams(vmem_limit_bytes=16 * 1024 * 1024),
    )(features, lab_row, lab_col)
    return out[0, 0]


def _reference_loss(features, labels, temperature=0.5):
    # Pure-JAX reference mirroring the PyTorch module, used for sanity check.
    f = features.astype(jnp.float32)
    lab = labels.reshape(-1, 1)
    mask = (lab == lab.T).astype(jnp.float32)
    norm = jnp.sqrt(jnp.sum(f * f, axis=1, keepdims=True))
    fn = f / jnp.maximum(norm, 1e-12)
    sim = (fn @ fn.T) / temperature
    logits = sim - jnp.max(sim, axis=1, keepdims=True)
    mask = mask * (1.0 - jnp.eye(mask.shape[0], dtype=jnp.float32))
    exp_logits = jnp.exp(logits) * mask
    log_prob = logits - jnp.log(jnp.sum(exp_logits, axis=1, keepdims=True) + 1e-9)
    mean_log_prob_pos = jnp.sum(mask * log_prob, axis=1) / (jnp.sum(mask, axis=1) + 1e-9)
    return -jnp.mean(mean_log_prob_pos)


if __name__ == "__main__":
    key = jax.random.PRNGKey(0)
    kf, kl = jax.random.split(key)

    B, D = 8, 32  # small batch of feature embeddings and integer class labels
    features = jax.random.normal(kf, (B, D), dtype=jnp.float32)
    labels = jax.random.randint(kl, (B,), 0, 3, dtype=jnp.int32)

    loss = supervised_contrastive_loss(features, labels, temperature=0.5)
    loss = jax.block_until_ready(loss)

    ref = jax.block_until_ready(_reference_loss(features, labels, temperature=0.5))
    assert jnp.allclose(loss, ref, atol=1e-5, rtol=1e-5), (loss, ref)

    print("KERNEL_OK")
</pallas_src>

<mosaic_0001>
module attributes {stable_mosaic.version = 11 : i64} {
  func.func @_supcon_kernel(%arg0: memref<8x32xf32, #tpu.memory_space<vmem>>, %arg1: memref<8x1xi32, #tpu.memory_space<vmem>>, %arg2: memref<1x8xi32, #tpu.memory_space<vmem>>, %arg3: memref<1x1xf32, #tpu.memory_space<vmem>>) attributes {dimension_semantics = [], scalar_prefetch = 0 : i64, scratch_operands = 0 : i64, tpu.core_type = #tpu.core_type<tc>} {
    %c0 = arith.constant 0 : index
    %c0_0 = arith.constant 0 : index
    %0 = vector.load %arg0[%c0, %c0_0] : memref<8x32xf32, #tpu.memory_space<vmem>>, vector<8x32xf32>
    %c0_1 = arith.constant 0 : index
    %c0_2 = arith.constant 0 : index
    %1 = vector.load %arg1[%c0_1, %c0_2] : memref<8x1xi32, #tpu.memory_space<vmem>>, vector<8x1xi32>
    %c0_3 = arith.constant 0 : index
    %c0_4 = arith.constant 0 : index
    %2 = vector.load %arg2[%c0_3, %c0_4] : memref<1x8xi32, #tpu.memory_space<vmem>>, vector<1x8xi32>
    %3 = arith.mulf %0, %0 : vector<8x32xf32>
    %cst = arith.constant dense<0.000000e+00> : vector<8xf32>
    %4 = vector.multi_reduction <add>, %3, %cst [1] : vector<8x32xf32> to vector<8xf32>
    %5 = vector.shape_cast %4 : vector<8xf32> to vector<8x1xf32>
    %cst_5 = arith.constant 1.000000e-24 : f32
    %6 = vector.broadcast %cst_5 : f32 to vector<8x1xf32>
    %7 = arith.maximumf %5, %6 : vector<8x1xf32>
    %8 = math.rsqrt %7 : vector<8x1xf32>
    %9 = vector.broadcast %8 : vector<8x1xf32> to vector<8x32xf32>
    %10 = arith.mulf %0, %9 : vector<8x32xf32>
    %cst_6 = arith.constant dense<0.000000e+00> : vector<8x8xf32>
    %11 = tpu.matmul %10, %10, %cst_6 {dimension_numbers = #tpu.dot_dimension_numbers<[1], [1], [0], [0], [0, 0, 1, 0], [], []>} : vector<8x32xf32>, vector<8x32xf32>, vector<8x8xf32> -> vector<8x8xf32>
    %cst_7 = arith.constant 2.000000e+00 : f32
    %12 = vector.broadcast %cst_7 : f32 to vector<8x8xf32>
    %13 = arith.mulf %11, %12 : vector<8x8xf32>
    %cst_8 = arith.constant dense<0xFF800000> : vector<8xf32>
    %14 = vector.multi_reduction <maximumf>, %13, %cst_8 [1] : vector<8x8xf32> to vector<8xf32>
    %15 = vector.shape_cast %14 : vector<8xf32> to vector<8x1xf32>
    %16 = vector.broadcast %15 : vector<8x1xf32> to vector<8x8xf32>
    %17 = arith.subf %13, %16 : vector<8x8xf32>
    %18 = tpu.iota {dimensions = array<i32: 0>} : vector<8x8xi32>
    %19 = tpu.iota {dimensions = array<i32: 1>} : vector<8x8xi32>
    %20 = vector.broadcast %1 : vector<8x1xi32> to vector<8x8xi32>
    %21 = vector.broadcast %2 : vector<1x8xi32> to vector<8x8xi32>
    %22 = arith.cmpi eq, %20, %21 : vector<8x8xi32>
    %23 = arith.cmpi ne, %18, %19 : vector<8x8xi32>
    %24 = arith.andi %22, %23 : vector<8x8xi1>
    %cst_9 = arith.constant 1.000000e+00 : f32
    %cst_10 = arith.constant 0.000000e+00 : f32
    %25 = vector.broadcast %cst_9 : f32 to vector<8x8xf32>
    %26 = vector.broadcast %cst_10 : f32 to vector<8x8xf32>
    %27 = arith.select %24, %25, %26 : vector<8x8xi1>, vector<8x8xf32>
    %28 = math.exp %17 : vector<8x8xf32>
    %cst_11 = arith.constant 0.000000e+00 : f32
    %29 = vector.broadcast %cst_11 : f32 to vector<8x8xf32>
    %30 = arith.select %24, %28, %29 : vector<8x8xi1>, vector<8x8xf32>
    %cst_12 = arith.constant dense<0.000000e+00> : vector<8xf32>
    %31 = vector.multi_reduction <add>, %30, %cst_12 [1] : vector<8x8xf32> to vector<8xf32>
    %32 = vector.shape_cast %31 : vector<8xf32> to vector<8x1xf32>
    %cst_13 = arith.constant 9.99999971E-10 : f32
    %33 = vector.broadcast %cst_13 : f32 to vector<8x1xf32>
    %34 = arith.addf %32, %33 : vector<8x1xf32>
    %35 = math.log %34 : vector<8x1xf32>
    %36 = vector.broadcast %35 : vector<8x1xf32> to vector<8x8xf32>
    %37 = arith.subf %17, %36 : vector<8x8xf32>
    %cst_14 = arith.constant 0.000000e+00 : f32
    %38 = vector.broadcast %cst_14 : f32 to vector<8x8xf32>
    %39 = arith.select %24, %37, %38 : vector<8x8xi1>, vector<8x8xf32>
    %cst_15 = arith.constant dense<0.000000e+00> : vector<8xf32>
    %40 = vector.multi_reduction <add>, %39, %cst_15 [1] : vector<8x8xf32> to vector<8xf32>
    %41 = vector.shape_cast %40 : vector<8xf32> to vector<8x1xf32>
    %cst_16 = arith.constant dense<0.000000e+00> : vector<8xf32>
    %42 = vector.multi_reduction <add>, %27, %cst_16 [1] : vector<8x8xf32> to vector<8xf32>
    %43 = vector.shape_cast %42 : vector<8xf32> to vector<8x1xf32>
    %cst_17 = arith.constant 9.99999971E-10 : f32
    %44 = vector.broadcast %cst_17 : f32 to vector<8x1xf32>
    %45 = arith.addf %43, %44 : vector<8x1xf32>
    %46 = arith.divf %41, %45 : vector<8x1xf32>
    %cst_18 = arith.constant dense<0.000000e+00> : vector<1xf32>
    %47 = vector.multi_reduction <add>, %46, %cst_18 [0] : vector<8x1xf32> to vector<1xf32>
    %48 = vector.shape_cast %47 : vector<1xf32> to vector<1x1xf32>
    %cst_19 = arith.constant 8.000000e+00 : f32
    %49 = vector.broadcast %cst_19 : f32 to vector<1x1xf32>
    %50 = arith.divf %48, %49 : vector<1x1xf32>
    %cst_20 = arith.constant 0.000000e+00 : f32
    %51 = vector.broadcast %cst_20 : f32 to vector<1x1xf32>
    %52 = arith.subf %51, %50 : vector<1x1xf32>
    %c0_21 = arith.constant 0 : index
    %c0_22 = arith.constant 0 : index
    %53 = vector.load %arg3[%c0_21, %c0_22] : memref<1x1xf32, #tpu.memory_space<vmem>>, vector<1x1xf32>
    tpu.vector_store %arg3[%c0_21, %c0_22], %52 {strides = array<i32>} : memref<1x1xf32, #tpu.memory_space<vmem>>, vector<1x1xf32>,
    return
  }
}

</mosaic_0001>

<bundles_post_ra>
// kernel: tpu_custom_call.1
= control target key start
LH: loop header
LB: loop body
LE: loop exit
PB: predicated region body
PF: predicated region fallthrough
CT: control target
= control target key end

     0   :  { %vm19_vm0 = vcmask 261120   ;;  %s272_s0 = inlined_call_operand.vmem [shape: f32[8,32], index: 0, kind: input, shape index: {}]   ;;  %s273_s1 = inlined_call_operand.vmem [shape: s32[8,1], index: 1, kind: input, shape index: {}]   ;;  %s274_s2 = inlined_call_operand.vmem [shape: s32[1,8], index: 2, kind: input, shape index: {}]   ;;  %s275_s3 = inlined_call_operand.hbm [shape: f32[1,1], index: 3, kind: output, shape index: {}]  }
   0x1   :  { %v15_v0 = vld [vmem:[%s272_s0] sm:$0xff] }
   0x2   :  { %8 = vsyncpa [#allocation3], 0  ;;  %v18_v1 = vmul.f32 %v15_v0, %v15_v0  ;;  %v213_v3 = vmov 0.0   ;;  %vm214_vm1 = vmmov 0   ;;  %v16_v8 = vld [vmem:[%s273_s1] sm:$0xff]  ;;  %v215_v9 = vmov 0  }
   0x3   :  { %170 = vmatprep.subr.mxu0 %v213_v3  ;;  %172 = vmatprep.mubr.msk.f32.mxu0 %vm214_vm1, %v213_v3  ;;  %vm100_vm2 = vcmask 64512   ;;  %v167_v14 = vld [vmem:[%s274_s2] ss:$0 sm:$0xff]  ;;  %v105_v15 = vlaneseq  ;;  %s216_s1 = smov [#allocation2]   ;;  %vm149_vm6 = vcmask 0  }
   0x4   :  { %v20_v2 = vsel %vm19_vm0, %v18_v1, 0.0  ;;  %179 = vset.pattern.permute.xlu1 %v215_v9  ;;  %180 = vset.pattern.permute.xlu0 %v215_v9  ;;  %s157_s2 = sshll.u32 %s216_s1, 4  ;;  %s158_s2 = int_to_ptr.vmem [resolvable:$true] %s157_s2 }
   0x5   :  { %21 = vadd.xlane.f32.xlu0 %v20_v2  ;;  %110 = vperm.xlu1 %179, %v16_v8   ;;  %v106_v17 = vshrl.u32 %v105_v15, 7  ;;  %v108_v18 = vand.u32 127, %v105_v15  ;;  %s189_s17 = scalar_lea.vmem %s158_s2, 16  ;;  %s193_s18 = scalar_lea.vmem %s158_s2, 32 }
   0x6   :  { %p190_p0 = scmp.ne.s32.totalorder %s158_s2, %s189_s17  ;;  %p194_p1 = scmp.lt.s32.totalorder %s158_s2, %s158_s2 }
   0x7   :  { %vm117_vm4 = vcmp.ne.s32.totalorder %v106_v17, %v108_v18  ;;  %p195_p2 = scmp.lt.s32.totalorder %s193_s18, %s189_s17 }
   0x9   :  { %p196_p3 = por %p195_p2, %p194_p1 }
   0xb   :  { %p197_p4 = pnand %p196_p3, %p190_p0 }
  0x84   :  { %v111_v16 = vpop.permute.xlu1 %110 }
  0x85   :  { %vm116_vm3 = vcmp.eq.s32.totalorder %v111_v16, %v167_v14 }
  0x86   :  { %vm247_vm5 = vmand %vm116_vm3, %vm117_vm4 }
  0x87   :  { %v119_v20 = vsel %vm247_vm5, 1.0, %v213_v3 }
  0x88   :  { %v134_v21 = vsel %vm100_vm2, %v119_v20, 0.0 }
  0x92   :  { %v22_v4 = vpop.xlane.xlu0 %21 }
  0x93   :  { %v23_v5 = vmax.f32 %v22_v4, 1e-24 }
  0x95   :  { %181 = vrsqrt.f32 %v23_v5 }
  0x9f   :  { %v182_v6 = vpop.eup %181 }
  0xa0   :  { %v25_v7 = vmul.f32 %v182_v6, %v15_v0 }
  0xa2   :  { %171 = vmatpush3.xpose.msk.msra.mxu0 %vm19_vm0, %v25_v7 }
  0xa5   :  { %173 = vmatmul.mubr.msk.f32.vlgmr.msra.gmra.mrb[0].mxu0 %vm19_vm0, %v25_v7 }
 0x178   :  { %v95_v10 = vpop.f32.mrb[0].mxu0 }
 0x179   :  { %v99_v11 = vmul.f32 2.0, %v95_v10  ;;  %v174_v12 = vpop.f32.mrb[1].mxu0 }
 0x17b   :  { %v101_v13 = vsel %vm100_vm2, %v99_v11, -inf }
 0x17c   :  { %102 = vmax.xlane.f32.xlu0 %v101_v13 }
 0x180   :  { %135 = vadd.xlane.f32.xlu0 %v134_v21 }
 0x209   :  { %v103_v22 = vpop.xlane.xlu0 %102 }
 0x20a   :  { %v104_v23 = vsub.f32 %v99_v11, %v103_v22 }
 0x20c   :  { %v120_v24 = vmul.f32 1.442695, %v104_v23 }
 0x20d   :  { %v136_v35 = vpop.xlane.xlu0 %135 }
 0x20e   :  { %183 = vpow2.f32 %v120_v24  ;;  %v137_v36 = vadd.f32 1e-09, %v136_v35 }
 0x218   :  { %v184_v25 = vpop.eup %183 }
 0x219   :  { %v122_v26 = vsel %vm247_vm5, %v184_v25, 0.0 }
 0x21a   :  { %v123_v27 = vsel %vm100_vm2, %v122_v26, 0.0 }
 0x21b   :  { %124 = vadd.xlane.f32.xlu1 %v123_v27 }
 0x2a8   :  { %v125_v28 = vpop.xlane.xlu1 %124 }
 0x2a9   :  { %v126_v29 = vadd.f32 1e-09, %v125_v28 }
 0x2ab   :  { %185 = vlog2.f32 %v126_v29 }
 0x2ac   :  { %187 = vrcp.f32 %v137_v36 }
 0x2b5   :  { %v186_v30 = vpop.eup %185 }
 0x2b6   :  { %v128_v31 = vmul.f32 0.6931472, %v186_v30  ;;  %v188_v37 = vpop.eup %187 }
 0x2b8   :  { %v129_v32 = vsub.f32 %v104_v23, %v128_v31 }
 0x2ba   :  { %v130_v33 = vsel %vm247_vm5, %v129_v32, 0.0 }
 0x2bb   :  { %v131_v34 = vsel %vm100_vm2, %v130_v33, 0.0 }
 0x2bc   :  { %132 = vadd.xlane.f32.xlu0 %v131_v34 }
 0x349   :  { %v133_v38 = vpop.xlane.xlu0 %132 }
 0x34a   :  { %v139_v39 = vmul.f32 %v188_v37, %v133_v38 }
 0x34c   :  { %v140_v40 = vrot.slane %v139_v39, 4 }
 0x34e   :  { %v141_v41 = vadd.f32 %v140_v40, %v139_v39 }
 0x350   :  { %v142_v42 = vrot.slane %v141_v41, 2 }
 0x352   :  { %v143_v43 = vadd.f32 %v142_v42, %v141_v41 }
 0x354   :  { %v144_v44 = vrot.slane %v143_v43, 1 }
 0x356   :  { %v145_v45 = vadd.f32 %v144_v44, %v143_v43 }
 0x358   :  { %v147_v46 = vmul.f32 0.125, %v145_v45 }
 0x35a   :  { %v148_v47 = vsub.f32 0.0, %v147_v46 }
 0x35c   :  { %150 = vst.msk [vmem:[#allocation2] sm:$0x1] %vm149_vm6, %v148_v47 }
 0x35d   :  { %200 = shalt.err (!%p197_p4)
}
 0x35e   :  { %s201_s21 = scalar_lea.hbm %s275_s3, 16 }
 0x35f   :  { %p202_p5 = scmp.ne.s32.totalorder %s275_s3, %s201_s21  ;;  %p205_p6 = scmp.lt.u32.totalorder %s201_s21, %s275_s3 }
 0x361   :  { %p207_p7 = pnand %p205_p6, %p202_p5 }
 0x363   :  { %210 = shalt.err (!%p207_p7)
}
 0x364   :  { %160 = dma.vmem_to_hbm [thread:$0]  %s158_s2, 16, %s275_s3, [#allocation3]  }
 0x365   :  { %211 = dma.done.wait [#allocation3], 16  }
 0x366   :  { %212 = vsyncadd [#allocation3], 4294967280 }
 0x367   :  { %164 = vsyncpa [#allocation3], 1 }

</bundles_post_ra>
